<compile_context>
chip_gen: v5e
topology: v5e:2x2
jax: 0.10.0
libtpu: 0.0.40
codegen_flags: <defaults>
</compile_context>

<pallas_src>
import functools
import math

import jax
import jax.numpy as jnp
import numpy as np
from jax.experimental import pallas as pl
from jax.experimental.pallas import tpu as pltpu


# ------------------------------------------------------------------
# Kernel: one grid step == one sequence tile.
#   x_ref:   (tile_s, B*D)   — seq on sublanes, features on lanes (dense)
#   pe_ref:  (tile_s, D)
#   out_ref: (tile_s, B*D)
# ------------------------------------------------------------------
def _pos_encoding_kernel(x_ref, pe_ref, out_ref, *, batch: int):
    pe = pe_ref[...]                                    # (tile_s, D)
    if batch > 1:
        # Broadcast over batch = repeat along the lane axis; for D a multiple
        # of 128 this is just lane-block vreg copies (cheap, hidden under DMA).
        pe = jnp.concatenate([pe] * batch, axis=-1)     # (tile_s, B*D)
    out_ref[...] = x_ref[...] + pe


# ------------------------------------------------------------------
# Buffer construction (mirrors PositionalEncoding.__init__ / register_buffer)
# ------------------------------------------------------------------
def make_positional_encoding_buffer(d_model: int, max_len: int = 5000,
                                    dtype=jnp.float32):
    assert d_model % 2 == 0, "d_model must be even (sin/cos interleave)"
    position = jnp.arange(max_len, dtype=jnp.float32)[:, None]            # (L, 1)
    div_term = jnp.exp(
        jnp.arange(0, d_model, 2, dtype=jnp.float32)
        * (-math.log(10000.0) / d_model)
    )                                                                     # (D/2,)
    angles = position * div_term                                          # (L, D/2)
    pe = jnp.zeros((max_len, d_model), dtype=jnp.float32)
    pe = pe.at[:, 0::2].set(jnp.sin(angles))
    pe = pe.at[:, 1::2].set(jnp.cos(angles))
    # unsqueeze(0).transpose(0, 1)  ->  (max_len, 1, d_model)
    return pe[:, None, :].astype(dtype)


# ------------------------------------------------------------------
# VMEM-aware sequence-tile selection.
# ------------------------------------------------------------------
def _choose_tile_s(S: int, B: int, D: int, itemsize: int,
                   vmem_budget_bytes: int, min_parallel_steps: int = 2) -> int:
    # Per sequence-row bytes across the double-buffered x-in, out and pe blocks.
    row_bytes = (2 * B * D + D) * itemsize
    tile = vmem_budget_bytes // (2 * row_bytes)
    tile = max(8, (tile // 8) * 8)
    # Keep at least `min_parallel_steps` grid steps when the sequence is long
    # enough, so v7x's second TensorCore gets work (no-op on v5e/v6e).
    if S >= 8 * min_parallel_steps:
        per_step = (S + min_parallel_steps - 1) // min_parallel_steps
        cap = max(8, ((per_step + 7) // 8) * 8)
        tile = min(tile, cap)
    if tile >= S:
        return S        # tiny sequences: single full block (= full array dim)
    return tile


# ------------------------------------------------------------------
# Wrapper
# ------------------------------------------------------------------
def positional_encoding(x, pe, *, vmem_budget_bytes: int = 24 * 1024 * 1024):
    """x: (S, B, D); pe: (max_len, 1, D) -> (S, B, D), out = x + pe[:S]."""
    S, B, D = x.shape
    max_len = pe.shape[0]
    assert pe.shape == (max_len, 1, D)
    assert max_len >= S, "sequence longer than max_len of the pe buffer"

    # Free collapsing reshapes (no data movement): seq on sublanes, lanes dense.
    x2 = x.reshape(S, B * D)
    pe2 = pe.reshape(max_len, D).astype(x.dtype)   # match activation dtype

    tile_s = _choose_tile_s(S, B, D, jnp.dtype(x.dtype).itemsize,
                            vmem_budget_bytes)
    grid = (pl.cdiv(S, tile_s),)

    out2 = pl.pallas_call(
        functools.partial(_pos_encoding_kernel, batch=B),
        out_shape=jax.ShapeDtypeStruct((S, B * D), x.dtype),
        grid_spec=pltpu.PrefetchScalarGridSpec(
            num_scalar_prefetch=0,
            grid=grid,
            in_specs=[
                pl.BlockSpec((tile_s, B * D), lambda i: (i, 0)),  # x tile
                pl.BlockSpec((tile_s, D), lambda i: (i, 0)),      # pe rows
            ],
            out_specs=pl.BlockSpec((tile_s, B * D), lambda i: (i, 0)),
        ),
        compiler_params=pltpu.CompilerParams(
            dimension_semantics=("parallel",),
            vmem_limit_bytes=32 * 1024 * 1024,
        ),
        input_output_aliases={0: 0},   # donate x -> out (same shape & dtype)
    )(x2, pe2)

    return out2.reshape(S, B, D)


# ------------------------------------------------------------------
# Pure-JAX reference (mirrors the PyTorch forward)
# ------------------------------------------------------------------
def reference_positional_encoding(x, pe):
    S = x.shape[0]
    return x + pe[:S, :]


# ------------------------------------------------------------------
if __name__ == "__main__":
    # Small, deterministic example shapes: seq=256, batch=2, d_model=128.
    S, B, D = 256, 2, 128
    MAX_LEN = 5000

    key = jax.random.PRNGKey(0)
    x = jax.random.normal(key, (S, B, D), dtype=jnp.float32)

    pe = make_positional_encoding_buffer(D, MAX_LEN)      # (5000, 1, 128)

    # Reference first (x's buffer is donated to the kernel output).
    ref = reference_positional_encoding(x, pe)
    ref = jax.block_until_ready(ref)

    out = positional_encoding(x, pe)
    out = jax.block_until_ready(out)

    np.testing.assert_allclose(np.asarray(out), np.asarray(ref),
                               rtol=1e-6, atol=1e-6)

    print("KERNEL_OK")
</pallas_src>

<mosaic_0001>
module attributes {stable_mosaic.version = 11 : i64} {
  func.func @_pos_encoding_kernel(%arg0: i32, %arg1: memref<128x256xf32, #tpu.memory_space<vmem>>, %arg2: memref<128x128xf32, #tpu.memory_space<vmem>>, %arg3: memref<128x256xf32, #tpu.memory_space<vmem>>) attributes {dimension_semantics = [#tpu.dimension_semantics<parallel>], iteration_bounds = array<i64: 2>, scalar_prefetch = 0 : i64, scratch_operands = 0 : i64, tpu.core_type = #tpu.core_type<tc>, window_params = [{transform_indices = @transform_0, window_bounds = array<i64: 128, 256>}, {transform_indices = @transform_1, window_bounds = array<i64: 128, 128>}, {transform_indices = @transform_2, window_bounds = array<i64: 128, 256>}]} {
    %c0 = arith.constant 0 : index
    %c0_0 = arith.constant 0 : index
    %0 = vector.load %arg2[%c0, %c0_0] : memref<128x128xf32, #tpu.memory_space<vmem>>, vector<128x128xf32>
    %1 = tpu.concatenate %0, %0 in 1 : vector<128x128xf32>, vector<128x128xf32> -> vector<128x256xf32>
    %c0_1 = arith.constant 0 : index
    %c0_2 = arith.constant 0 : index
    %2 = vector.load %arg1[%c0_1, %c0_2] : memref<128x256xf32, #tpu.memory_space<vmem>>, vector<128x256xf32>
    %3 = arith.addf %2, %1 : vector<128x256xf32>
    %c0_3 = arith.constant 0 : index
    %c0_4 = arith.constant 0 : index
    %4 = vector.load %arg3[%c0_3, %c0_4] : memref<128x256xf32, #tpu.memory_space<vmem>>, vector<128x256xf32>
    tpu.vector_store %arg3[%c0_3, %c0_4], %3 {strides = array<i32>} : memref<128x256xf32, #tpu.memory_space<vmem>>, vector<128x256xf32>,
    return
  }
  func.func @transform_0(%arg0: i32) -> (i32, i32) {
    %c0_i32 = arith.constant 0 : i32
    %c0_i32_0 = arith.constant 0 : i32
    return %arg0, %c0_i32 : i32, i32
  }
  func.func @transform_1(%arg0: i32) -> (i32, i32) {
    %c0_i32 = arith.constant 0 : i32
    %c0_i32_0 = arith.constant 0 : i32
    return %arg0, %c0_i32 : i32, i32
  }
  func.func @transform_2(%arg0: i32) -> (i32, i32) {
    %c0_i32 = arith.constant 0 : i32
    %c0_i32_0 = arith.constant 0 : i32
    return %arg0, %c0_i32 : i32, i32
  }
}

</mosaic_0001>

<bundles_post_ra>
// kernel: tpu_custom_call.1
= control target key start
LH: loop header
LB: loop body
LE: loop exit
PB: predicated region body
PF: predicated region fallthrough
CT: control target
= control target key end

     0   :  { %7 = vsyncpa [#allocation3], 0  ;;  %s944_s0 = inlined_call_operand.hbm [shape: f32[256,256], index: 0, kind: input, shape index: {}, may-alias: {0,2}]   ;;  %s945_s1 = inlined_call_operand.hbm [shape: f32[5000,128], index: 1, kind: input, shape index: {}]   ;;  %s946_s2 = inlined_call_operand.hbm [shape: f32[256,256], index: 2, kind: output, shape index: {}, may-alias: {0,2}]  }
   0x1   :  { %9 = vsyncpa [#allocation3 + $0x1], 0 }
   0x2   :  { %10 = vsyncpa [#allocation6], 0 }
   0x3   :  { %12 = vsyncpa [#allocation6 + $0x1], 0 }
   0x4   :  { %13 = vsyncpa [#allocation4], 0 }
   0x5   :  { %15 = vsyncpa [#allocation4 + $0x1], 0  ;;  %s684_s9 = smov 0   ;;  %s686_s10 = smov 0  }
   0x6   :  { %s688_s11 = smov 0   ;;  %s690_s12 = smov 0  }
   0x7 LB: > { %s705_s13 = sadd.s32 4294967295, %s660_s12   ;;  %s446_s14 = sadd.s32 4294967294, %s660_s12   ;;  %s660_s12 = sphi %s690_s12, %s957_s12   ;;  %s656_s11 = sphi %s688_s11, %s956_s11   ;;  %s652_s10 = sphi %s686_s10, %s955_s10   ;;  %s648_s9 = sphi %s684_s9, %s954_s9  }
   0x8   : > { %s709_s15 = sadd.s32 1, %s660_s12   ;;  %s28_s16 = sadd.s32 1, %s656_s11 }
   0x9   : > { %s25_s17 = ssub.s32 %s660_s12, %s709_s15  ;;  %p35_p0 = scmp.ne.s32.totalorder %s656_s11, %s652_s10 }
   0xa   : > { %p26_p1 = scmp.eq.s32.totalorder %s25_s17, 0  ;;  %p36_p2 = scmp.eq.s32.totalorder %s660_s12, 0 }
   0xb   : > { %p41_p3 = scmp.ne.s32.totalorder %s652_s10, %s648_s9  ;;  %p42_p4 = scmp.eq.s32.totalorder %s705_s13, 0 }
   0xc   : > { %s721_s18 = scalar_select %p26_p1, %s656_s11, %s28_s16  }
   0xd   : > { %p723_p5 = por %p36_p2, %p35_p0  ;;  %p727_p6 = por %p42_p4, %p41_p3 }
   0xe   : > { %p91_p7 = scmp.eq.s32.totalorder %s705_s13, 1  ;;  %p97_p8 = scmp.eq.s32.totalorder %s446_s14, 1 }
   0xf   : > { %p947_p11 = scmp.ge.s32.totalorder %s660_s12, 2 }
  0x10   : > { %p732_p9 = por %p91_p7, %p35_p0  ;;  %p736_p10 = por %p97_p8, %p41_p3 }
  0x11   : > { %113 = sbr.rel (%p947_p11) target bundleno = 70 (0x46), region = 16  ;;  %s744_s23 = sand.u32 (!%p947_p11), 1, %s656_s11  }
  0x12   : > { %s471_s24 = sshll.u32 (!%p947_p11), %s660_s12, 8  ;;  %s449_s25 = sshll.u32 (!%p947_p11), %s744_s23, 8 }
  0x13   : > { %s127_s28 = scalar_lea.hbm (!%p947_p11), %s944_s0, %s471_s24  ;;  %s121_s30 = scalar_lea.vmem (!%p947_p11), [#allocation2], %s449_s25 }
  0x14   : > { %s128_s29 = sshll.u32 (!%p947_p11), %s127_s28, 4  ;;  %s130_s3 = sshll.u32 (!%p947_p11), %s121_s30, 4  ;;  %s129_s29 = int_to_ptr.hbm [resolvable:$true] %s128_s29  ;;  %s131_s3 = int_to_ptr.vmem [resolvable:$true] %s130_s3 }
  0x15   : > { %s118_s4 = scalar_lea.sflag (!%p947_p11), [#allocation3], %s744_s23  ;;  %s523_s5 = sshra.s32 (!%p947_p11), %s129_s29, 4  ;;  %s524_s5 = int_to_ptr.hbm [resolvable:$true] %s523_s5 }
  0x16   : > { %s525_s6 = scalar_lea.hbm %s524_s5, 256  ;;  %s529_s14 = scalar_lea.hbm %s944_s0, 512 }
  0x17   : > { %p526_p12 = scmp.ne.s32.totalorder %s524_s5, %s525_s6  ;;  %p530_p1 = scmp.lt.s32.totalorder %s524_s5, %s944_s0 }
  0x18   : > { %p531_p2 = scmp.lt.s32.totalorder %s529_s14, %s525_s6 }
  0x19   : > { %p527_p13 = pnand %p526_p12, %p723_p5 }
  0x1a   : > { %p532_p3 = por %p531_p2, %p530_p1 }
  0x1b   : > { %p528_p0 = pneg %p527_p13 }
  0x1d   : > { %p533_p4 = pnand %p532_p3, %p528_p0 }
  0x1f   : > { %536 = shalt.err (!%p533_p4)
}
  0x20   : > { %s662_s24 = smov 256   ;;  %s663_s25 = smov 16  }
  0x21   : > { %475 = dma.hbm_to_vmem [thread:$0]  (%p723_p5), %s129_s29, 4096, %s131_s3, %s118_s4, %s662_s24, %s662_s24, %s663_s25  }
  0x22   : > { %139 = sbr.rel (!%p723_p5) target bundleno = 70 (0x46), region = 24  ;;  %s453_s26 = sshll.u32 (%p723_p5), %s744_s23, 7 }
  0x23   : > { %s454_s27 = sshll.u32 (%p723_p5), %s660_s12, 4  ;;  %s141_s7 = scalar_lea.sflag (%p723_p5), [#allocation6], %s744_s23 }
  0x24   : > { %s146_s28 = ssub.s32 (%p723_p5), 625, %s454_s27  ;;  %s144_s8 = scalar_lea.vmem (%p723_p5), [#allocation5], %s453_s26 }
  0x25   : > { %p147_p7 = scmp.lt.s32.totalorder (%p723_p5), %s146_s28, 16 }
  0x27   : > { %s959_s28 = smov (!%p147_p7, %s146_s28), 16 }
  0x28   : > { %s455_s30 = sshll.u32 %s959_s28, 3 }
  0x29   : > { %s150_s5 = ssub.s32 128, %s455_s30 }
  0x2a   : > { %s151_s6 = sshll.u32 %s150_s5, 4 }
  0x2b   : > { %152 = vsyncadd %s141_s7, %s151_s6  ;;  %p772_p5 = scmp.ne.s32.totalorder %s455_s30, 0  ;;  %s472_s29 = sshll.u32 %s660_s12, 7 }
  0x2c   : > { %s155_s14 = scalar_lea.hbm %s945_s1, %s472_s29  ;;  %s159_s16 = sshll.u32 %s144_s8, 4  ;;  %s780_s16 = int_to_ptr.vmem [resolvable:$true] %s159_s16 }
  0x2d   : > { %s157_s17 = sshll.u32 %s155_s14, 4  ;;  %s459_s24 = sshll.u32 %s959_s28, 7  ;;  %s782_s17 = int_to_ptr.hbm [resolvable:$true] %s157_s17 }
  0x2e   : > { %s551_s25 = sshra.s32 %s782_s17, 4  ;;  %s553_s26 = sshrl.u32 %s459_s24, 4  ;;  %s552_s25 = int_to_ptr.hbm [resolvable:$true] %s551_s25 }
  0x2f   : > { %s558_s27 = scalar_lea.hbm %s552_s25, %s553_s26  ;;  %s562_s6 = scalar_lea.hbm %s945_s1, 5000 }
  0x30   : > { %p559_p8 = scmp.ne.s32.totalorder %s552_s25, %s558_s27  ;;  %p563_p0 = scmp.lt.s32.totalorder %s552_s25, %s945_s1 }
  0x31   : > { %p564_p1 = scmp.lt.s32.totalorder %s562_s6, %s558_s27 }
  0x32   : > { %p560_p12 = pnand %p559_p8, %p772_p5 }
  0x33   : > { %p565_p2 = por %p564_p1, %p563_p0 }
  0x34   : > { %p561_p13 = pneg %p560_p12 }
  0x36   : > { %p566_p3 = pnand %p565_p2, %p561_p13 }
  0x38   : > { %569 = shalt.err (!%p566_p3)
}
  0x39   : > { %s570_s3 = sshra.s32 %s780_s16, 4  ;;  %s664_s14 = smov [#allocation5]   ;;  %s571_s3 = int_to_ptr.vmem [resolvable:$true] %s570_s3 }
  0x3a   : > { %s577_s4 = scalar_lea.vmem %s571_s3, %s553_s26  ;;  %s581_s30 = scalar_lea.vmem %s664_s14, 256 }
  0x3b   : > { %p578_p4 = scmp.ne.s32.totalorder %s571_s3, %s577_s4  ;;  %p583_p12 = scmp.lt.s32.totalorder %s581_s30, %s577_s4 }
  0x3d   : > { %p579_p7 = pnand %p578_p4, %p772_p5 }
  0x3f   : > { %p580_p8 = pneg %p579_p7 }
  0x41   : > { %p585_p11 = pnand %p583_p12, %p580_p8 }
  0x43   : > { %588 = shalt.err (!%p585_p11)
}
  0x44   : > { %s665_s5 = smov 128   ;;  %s666_s25 = smov 8  }
  0x45   : > { %165 = dma.hbm_to_vmem [thread:$0]  (%p772_p5), %s782_s17, %s459_s24, %s780_s16, %s141_s7, %s665_s5, %s665_s5, %s666_s25  }
  0x46 PF: > { %p460_p13 = scmp.ge.s32.totalorder %s660_s12, 1  ;;  %p167_p0 = scmp.lt.s32.totalorder %s660_s12, 3 }
  0x48   : > { %p168_p1 = pnand %p460_p13, %p167_p0 }
  0x49   : > { %s810_s26 = sand.u32 (!%p168_p1), 1, %s652_s10  }
  0x4a   : > { %171 = sbr.rel (%p168_p1) target bundleno = 121 (0x79), region = 28  ;;  %s461_s27 = sshll.u32 (!%p168_p1), %s810_s26, 8 }
  0x4b   : > { %s174_s6 = scalar_lea.sflag (!%p168_p1), [#allocation3], %s810_s26  ;;  %s814_s19 = scalar_lea.vmem (!%p168_p1), [#allocation2], %s461_s27 }
  0x4f   : > { %635 = dma.done.wait (%p727_p6), %s174_s6, 4096  }
  0x50   : > { %637 = vsyncadd (%p727_p6), %s174_s6, 4294963200  ;;  %s462_s23 = sshll.u32 %s810_s26, 7  ;;  %s184_s28 = scalar_lea.sflag [#allocation6], %s810_s26 }
  0x51   : > { %s822_s7 = scalar_lea.vmem [#allocation5], %s462_s23 }
  0x52   : > { %639 = dma.done.wait (%p727_p6), %s184_s28, 2048  }
  0x53   : > { %641 = vsyncadd (%p727_p6), %s184_s28, 4294965248  ;;  %v221_v0 = vld [vmem:[%s822_s7] sm:$0xff]  ;;  %v238_v2 = vld [vmem:[%s814_s19 + $0x8] sm:$0xff]  ;;  %s837_s20 = scalar_lea.vmem [#allocation7], %s461_s27  ;;  %s474_s16 = sshll.u32 %s705_s13, 8 }
  0x54   : > { %v237_v1 = vld [vmem:[%s814_s19] sm:$0xff]  ;;  %v270_v4 = vadd.f32 %v238_v2, %v221_v0  ;;  %v222_v5 = vld [vmem:[%s822_s7 + $0x8] sm:$0xff]  ;;  %v239_v6 = vld [vmem:[%s814_s19 + $0x10] sm:$0xff]  ;;  %s346_s13 = scalar_lea.hbm %s946_s2, %s474_s16  ;;  %s347_s8 = sshll.u32 %s837_s20, 4  ;;  %s348_s8 = int_to_ptr.vmem [resolvable:$true] %s347_s8 }
  0x55   : > { %v269_v3 = vadd.f32 %v237_v1, %v221_v0  ;;  %v240_v7 = vld [vmem:[%s814_s19 + $0x18] sm:$0xff]  ;;  %v271_v8 = vadd.f32 %v239_v6, %v222_v5  ;;  %v223_v10 = vld [vmem:[%s822_s7 + $0x10] sm:$0xff]  ;;  %v241_v11 = vld [vmem:[%s814_s19 + $0x20] sm:$0xff]  ;;  %s349_s29 = sshll.u32 %s346_s13, 4  ;;  %s334_s3 = scalar_lea.sflag [#allocation4], %s810_s26  ;;  %s350_s29 = int_to_ptr.hbm [resolvable:$true] %s349_s29 }
  0x56   : > { %v272_v9 = vadd.f32 %v240_v7, %v222_v5  ;;  %v242_v12 = vld [vmem:[%s814_s19 + $0x28] sm:$0xff]  ;;  %v273_v13 = vadd.f32 %v241_v11, %v223_v10  ;;  %v224_v14 = vld [vmem:[%s822_s7 + $0x18] sm:$0xff]  ;;  %v243_v15 = vld [vmem:[%s814_s19 + $0x30] sm:$0xff]  ;;  %302 = vst [vmem:[%s837_s20 + $0x8] sm:$0xff] %v270_v4  ;;  %s604_s4 = sshra.s32 %s350_s29, 4  ;;  %s610_s25 = scalar_lea.hbm %s946_s2, 512  ;;  %s605_s4 = int_to_ptr.hbm [resolvable:$true] %s604_s4 }
  0x57   : > { %301 = vst [vmem:[%s837_s20] sm:$0xff] %v269_v3  ;;  %v244_v16 = vld [vmem:[%s814_s19 + $0x38] sm:$0xff]  ;;  %v274_v17 = vadd.f32 %v242_v12, %v223_v10  ;;  %v225_v18 = vld [vmem:[%s822_s7 + $0x20] sm:$0xff]  ;;  %v275_v20 = vadd.f32 %v243_v15, %v224_v14  ;;  %v246_v21 = vld [vmem:[%s814_s19 + $0x48] sm:$0xff]  ;;  %s606_s14 = scalar_lea.hbm %s605_s4, 256  ;;  %p611_p2 = scmp.lt.s32.totalorder %s605_s4, %s946_s2 }
  0x58   : > { %v245_v19 = vld [vmem:[%s814_s19 + $0x40] sm:$0xff]  ;;  %303 = vst [vmem:[%s837_s20 + $0x10] sm:$0xff] %v271_v8  ;;  %v276_v22 = vadd.f32 %v244_v16, %v224_v14  ;;  %v226_v23 = vld [vmem:[%s822_s7 + $0x28] sm:$0xff]  ;;  %v247_v24 = vld [vmem:[%s814_s19 + $0x50] sm:$0xff]  ;;  %v278_v27 = vadd.f32 %v246_v21, %v225_v18  ;;  %p607_p6 = scmp.ne.s32.totalorder %s605_s4, %s606_s14  ;;  %p612_p3 = scmp.lt.s32.totalorder %s610_s25, %s606_s14 }
  0x59   : > { %304 = vst [vmem:[%s837_s20 + $0x18] sm:$0xff] %v272_v9  ;;  %v277_v25 = vadd.f32 %v245_v19, %v225_v18  ;;  %v248_v26 = vld [vmem:[%s814_s19 + $0x58] sm:$0xff]  ;;  %v227_v28 = vld [vmem:[%s822_s7 + $0x30] sm:$0xff]  ;;  %v249_v29 = vld [vmem:[%s814_s19 + $0x60] sm:$0xff]  ;;  %v279_v30 = vadd.f32 %v247_v24, %v226_v23 }
  0x5a   : > { %305 = vst [vmem:[%s837_s20 + $0x20] sm:$0xff] %v273_v13  ;;  %v250_v31 = vld [vmem:[%s814_s19 + $0x68] sm:$0xff]  ;;  %v280_v32 = vadd.f32 %v248_v26, %v226_v23  ;;  %v228_v33 = vld [vmem:[%s822_s7 + $0x38] sm:$0xff]  ;;  %v251_v34 = vld [vmem:[%s814_s19 + $0x70] sm:$0xff]  ;;  %v281_v35 = vadd.f32 %v249_v29, %v227_v28  ;;  %p608_p11 = pnand %p607_p6, %p732_p9  ;;  %p613_p4 = por %p612_p3, %p611_p2 }
  0x5b   : > { %306 = vst [vmem:[%s837_s20 + $0x28] sm:$0xff] %v274_v17  ;;  %v252_v36 = vld [vmem:[%s814_s19 + $0x78] sm:$0xff]  ;;  %v282_v37 = vadd.f32 %v250_v31, %v227_v28  ;;  %v229_v38 = vld [vmem:[%s822_s7 + $0x40] sm:$0xff]  ;;  %v283_v40 = vadd.f32 %v251_v34, %v228_v33  ;;  %v254_v41 = vld [vmem:[%s814_s19 + $0x88] sm:$0xff] }
  0x5c   : > { %307 = vst [vmem:[%s837_s20 + $0x30] sm:$0xff] %v275_v20  ;;  %v253_v39 = vld [vmem:[%s814_s19 + $0x80] sm:$0xff]  ;;  %v284_v42 = vadd.f32 %v252_v36, %v228_v33  ;;  %v230_v43 = vld [vmem:[%s822_s7 + $0x48] sm:$0xff]  ;;  %v255_v44 = vld [vmem:[%s814_s19 + $0x90] sm:$0xff]  ;;  %v286_v47 = vadd.f32 %v254_v41, %v229_v38  ;;  %p609_p5 = pneg %p608_p11 }
  0x5d   : > { %308 = vst [vmem:[%s837_s20 + $0x38] sm:$0xff] %v276_v22  ;;  %v285_v45 = vadd.f32 %v253_v39, %v229_v38  ;;  %v256_v46 = vld [vmem:[%s814_s19 + $0x98] sm:$0xff]  ;;  %v231_v48 = vld [vmem:[%s822_s7 + $0x50] sm:$0xff]  ;;  %v257_v49 = vld [vmem:[%s814_s19 + $0xa0] sm:$0xff]  ;;  %v287_v50 = vadd.f32 %v255_v44, %v230_v43 }
  0x5e   : > { %309 = vst [vmem:[%s837_s20 + $0x40] sm:$0xff] %v277_v25  ;;  %v258_v51 = vld [vmem:[%s814_s19 + $0xa8] sm:$0xff]  ;;  %v288_v52 = vadd.f32 %v256_v46, %v230_v43  ;;  %v232_v53 = vld [vmem:[%s822_s7 + $0x58] sm:$0xff]  ;;  %v259_v54 = vld [vmem:[%s814_s19 + $0xb0] sm:$0xff]  ;;  %v289_v55 = vadd.f32 %v257_v49, %v231_v48  ;;  %p614_p7 = pnand %p613_p4, %p609_p5 }
  0x5f   : > { %310 = vst [vmem:[%s837_s20 + $0x48] sm:$0xff] %v278_v27  ;;  %v260_v56 = vld [vmem:[%s814_s19 + $0xb8] sm:$0xff]  ;;  %v290_v57 = vadd.f32 %v258_v51, %v231_v48  ;;  %v233_v58 = vld [vmem:[%s822_s7 + $0x60] sm:$0xff]  ;;  %v291_v60 = vadd.f32 %v259_v54, %v232_v53  ;;  %v262_v61 = vld [vmem:[%s814_s19 + $0xc8] sm:$0xff] }
  0x60   : > { %311 = vst [vmem:[%s837_s20 + $0x50] sm:$0xff] %v279_v30  ;;  %v261_v59 = vld [vmem:[%s814_s19 + $0xc0] sm:$0xff]  ;;  %v292_v62 = vadd.f32 %v260_v56, %v232_v53  ;;  %v234_v63 = vld [vmem:[%s822_s7 + $0x68] sm:$0xff]  ;;  %v263_v0 = vld [vmem:[%s814_s19 + $0xd0] sm:$0xff]  ;;  %v294_v3 = vadd.f32 %v262_v61, %v233_v58 }
  0x61   : > { %312 = vst [vmem:[%s837_s20 + $0x58] sm:$0xff] %v280_v32  ;;  %v293_v1 = vadd.f32 %v261_v59, %v233_v58  ;;  %v264_v2 = vld [vmem:[%s814_s19 + $0xd8] sm:$0xff]  ;;  %v235_v4 = vld [vmem:[%s822_s7 + $0x70] sm:$0xff]  ;;  %v265_v5 = vld [vmem:[%s814_s19 + $0xe0] sm:$0xff]  ;;  %v295_v6 = vadd.f32 %v263_v0, %v234_v63 }
  0x62   : > { %313 = vst [vmem:[%s837_s20 + $0x60] sm:$0xff] %v281_v35  ;;  %v266_v7 = vld [vmem:[%s814_s19 + $0xe8] sm:$0xff]  ;;  %v296_v8 = vadd.f32 %v264_v2, %v234_v63  ;;  %v236_v9 = vld [vmem:[%s822_s7 + $0x78] sm:$0xff]  ;;  %v267_v10 = vld [vmem:[%s814_s19 + $0xf0] sm:$0xff]  ;;  %v297_v11 = vadd.f32 %v265_v5, %v235_v4 }
  0x63   : > { %314 = vst [vmem:[%s837_s20 + $0x68] sm:$0xff] %v282_v37  ;;  %v268_v12 = vld [vmem:[%s814_s19 + $0xf8] sm:$0xff]  ;;  %v298_v13 = vadd.f32 %v266_v7, %v235_v4  ;;  %v299_v14 = vadd.f32 %v267_v10, %v236_v9 }
  0x64   : > { %315 = vst [vmem:[%s837_s20 + $0x70] sm:$0xff] %v283_v40  ;;  %v300_v15 = vadd.f32 %v268_v12, %v236_v9 }
  0x65   : > { %316 = vst [vmem:[%s837_s20 + $0x78] sm:$0xff] %v284_v42 }
  0x66   : > { %317 = vst [vmem:[%s837_s20 + $0x80] sm:$0xff] %v285_v45 }
  0x67   : > { %318 = vst [vmem:[%s837_s20 + $0x88] sm:$0xff] %v286_v47 }
  0x68   : > { %319 = vst [vmem:[%s837_s20 + $0x90] sm:$0xff] %v287_v50 }
  0x69   : > { %320 = vst [vmem:[%s837_s20 + $0x98] sm:$0xff] %v288_v52 }
  0x6a   : > { %321 = vst [vmem:[%s837_s20 + $0xa0] sm:$0xff] %v289_v55 }
  0x6b   : > { %322 = vst [vmem:[%s837_s20 + $0xa8] sm:$0xff] %v290_v57 }
  0x6c   : > { %323 = vst [vmem:[%s837_s20 + $0xb0] sm:$0xff] %v291_v60 }
  0x6d   : > { %324 = vst [vmem:[%s837_s20 + $0xb8] sm:$0xff] %v292_v62 }
  0x6e   : > { %325 = vst [vmem:[%s837_s20 + $0xc0] sm:$0xff] %v293_v1 }
  0x6f   : > { %326 = vst [vmem:[%s837_s20 + $0xc8] sm:$0xff] %v294_v3 }
  0x70   : > { %327 = vst [vmem:[%s837_s20 + $0xd0] sm:$0xff] %v295_v6 }
  0x71   : > { %328 = vst [vmem:[%s837_s20 + $0xd8] sm:$0xff] %v296_v8 }
  0x72   : > { %329 = vst [vmem:[%s837_s20 + $0xe0] sm:$0xff] %v297_v11 }
  0x73   : > { %330 = vst [vmem:[%s837_s20 + $0xe8] sm:$0xff] %v298_v13 }
  0x74   : > { %331 = vst [vmem:[%s837_s20 + $0xf0] sm:$0xff] %v299_v14 }
  0x75   : > { %332 = vst [vmem:[%s837_s20 + $0xf8] sm:$0xff] %v300_v15 }
  0x76   : > { %617 = shalt.err (!%p614_p7)
}
  0x77   : > { %s667_s26 = smov 256   ;;  %s668_s19 = smov 16  }
  0x78   : > { %478 = dma.vmem_to_hbm [thread:$0]  (%p732_p9), %s348_s8, 4096, %s350_s29, %s334_s3, %s667_s26, %s667_s26, %s668_s19  }
  0x79 PF: > { %s364_s23 = sand.u32 1, %s648_s9   ;;  %p953_p8 = scmp.ge.s32.totalorder %s660_s12, 2 }
  0x7a   : > { %s365_s28 = scalar_lea.sflag [#allocation4], %s364_s23 }
  0x7b   : > { %p481_p12 = pnand %p953_p8, %p736_p10 }
  0x7d   : > { %p482_p13 = pneg %p481_p12 }
  0x7f   : > { %643 = dma.done.wait (%p482_p13), %s365_s28, 4096  }
  0x80   : > { %645 = vsyncadd (%p482_p13), %s365_s28, 4294963200  ;;  %p18_p0 = scmp.ge.s32.totalorder %s709_s15, 4   ;;  %s954_s9 = smov %s652_s10 }
  0x81   : > { %s955_s10 = smov %s656_s11  ;;  %s956_s11 = smov %s721_s18 }
  0x82   : > { %s957_s12 = smov %s709_s15  ;;  %20 = sbr.rel (!%p18_p0) target bundleno = 7 (0x7), region = 86 }
  0x87   :  { %371 = vsyncpa [#allocation3], 1 }
  0x88   :  { %373 = vsyncpa [#allocation3 + $0x1], 1 }
  0x89   :  { %374 = vsyncpa [#allocation6], 1 }
  0x8a   :  { %376 = vsyncpa [#allocation6 + $0x1], 1 }
  0x8b   :  { %377 = vsyncpa [#allocation4], 1 }
  0x8c   :  { %379 = vsyncpa [#allocation4 + $0x1], 1 }

</bundles_post_ra>
